<compile_context>
chip_gen: v6e
topology: v6e:2x2x1
jax: 0.10.0
libtpu: 0.0.40
codegen_flags: <defaults>
</compile_context>

<pallas_src>
import jax
import jax.numpy as jnp
from jax.experimental import pallas as pl
from jax.experimental.pallas import tpu as pltpu

LANE = 128     # lane width: feature / hidden / class dims padded to this
SUBLANE = 8    # sublane width: node (row) dim only needs this alignment


# ---------------------------------------------------------------------------
# Pallas kernel: entire GINNet forward for one graph of the batch
# ---------------------------------------------------------------------------
def gin_net_fused_kernel(a0_ref, a1_ref, h_ref, w0_ref, b0_ref, w1wp_ref, b1_ref,
                         o_ref):
    """GINNet forward (eval mode) on one lane/sublane-padded graph.

    a0_ref   : (1, Np, Np) bf16   mean-normalized masked adjacency + (1+eps0)*I
    a1_ref   : (1, Np, Np) bf16   mean-normalized masked adjacency + (1+eps1)*I
    h_ref    : (1, Np, Dp) bf16   node features
    w0_ref   : (Dp, Hp)    bf16   layer-0 MLP weight (input-major, i.e. W^T)
    b0_ref   : (1, Hp)     f32    layer-0 MLP bias
    w1wp_ref : (Hp, 2*Cp)  bf16   packed [W1 | Wp] (layer-1 MLP | prediction head)
    b1_ref   : (1, Cp)     f32    layer-1 MLP bias
    o_ref    : (1, Np, Cp) f32    score_over_layer (padded)
    """
    c_p = o_ref.shape[-1]
    a0 = a0_ref[0]
    a1 = a1_ref[0]
    h = h_ref[0]

    # ---- GIN layer 0:
    #   relu(((1+eps0)*h + mean_neigh(h)) @ W0 + b0) == relu((A0 @ h) @ W0 + b0)
    agg0 = jnp.dot(a0, h, preferred_element_type=jnp.float32)
    z0 = jnp.dot(agg0.astype(jnp.bfloat16), w0_ref[...],
                 preferred_element_type=jnp.float32) + b0_ref[...]
    h1 = jnp.maximum(z0, 0.0)                       # (Np, Hp) f32
    h1b = h1.astype(jnp.bfloat16)

    # ---- GIN layer 1 + prediction head (share LHS h1 after reassociation):
    #   ((1+eps1)*h1 + A @ h1) @ W1 == A1 @ (h1 @ W1),   pred = h1 @ Wp
    # -> one 256-lane-wide matmul against the packed [W1 | Wp].
    t = jnp.dot(h1b, w1wp_ref[...], preferred_element_type=jnp.float32)  # (Np, 2*Cp)
    p = t[:, :c_p]          # h1 @ W1
    pred = t[:, c_p:]       # linears_prediction(h1), no bias

    z1 = jnp.dot(a1, p.astype(jnp.bfloat16),
                 preferred_element_type=jnp.float32) + b1_ref[...]
    h2 = jnp.maximum(z1, 0.0)

    # score_over_layer = (linears_prediction(h1) + h2) / 2
    o_ref[0] = (pred + h2) * 0.5


# ---------------------------------------------------------------------------
# Wrapper: pad/pack weights once, jitted batched forward
# ---------------------------------------------------------------------------
def _round_up(x, m):
    return ((x + m - 1) // m) * m


def _pad2d(x, rows, cols):
    r, c = x.shape
    return jnp.zeros((rows, cols), x.dtype).at[:r, :c].set(x)


def _pad_last2(x, rows, cols):
    b, r, c = x.shape
    return jnp.zeros((b, rows, cols), x.dtype).at[:, :r, :c].set(x)


def make_gin_forward(params):
    """Pad & pack the static weights once; return a jitted batched forward."""
    in_dim, hidden = params["w0"].shape
    n_classes = params["w1"].shape[1]
    d_p = _round_up(in_dim, LANE)
    h_p = _round_up(hidden, LANE)
    c_p = _round_up(n_classes, LANE)

    # Zero padding keeps the real [N, n_classes] block exact: padded weight rows and
    # columns are zero, so padded lanes never leak into real outputs.
    # (Note: padded *rows* of h1 would be relu(b0) != 0, but A's padded columns are
    #  zero and the result is row-sliced, so nothing leaks — latent hazard only if
    #  row-wise reductions are ever added inside the kernel.)
    w0p = _pad2d(params["w0"], d_p, h_p).astype(jnp.bfloat16)
    b0p = _pad2d(params["b0"], 1, h_p).astype(jnp.float32)
    w1wp = jnp.concatenate(
        [_pad2d(params["w1"], h_p, c_p), _pad2d(params["wp"], h_p, c_p)],
        axis=1).astype(jnp.bfloat16)                                   # (Hp, 2*Cp)
    b1p = _pad2d(params["b1"], 1, c_p).astype(jnp.float32)
    eps0 = params["eps0"].astype(jnp.float32)
    eps1 = params["eps1"].astype(jnp.float32)

    @jax.jit
    def forward(a_norm_b, h_b):
        """a_norm_b: (B, N, N) f32 masked mean-normalized adjacency; h_b: (B, N, D)."""
        bsz, n, _ = h_b.shape
        n_p = _round_up(n, SUBLANE)   # rows only need sublane (8) alignment

        # Fold (1 + eps_l) into the diagonal -> GIN update becomes a pure matmul.
        eye = jnp.eye(n, dtype=jnp.float32)
        a0 = _pad_last2(a_norm_b + (1.0 + eps0[0]) * eye, n_p, n_p).astype(jnp.bfloat16)
        a1 = _pad_last2(a_norm_b + (1.0 + eps1[0]) * eye, n_p, n_p).astype(jnp.bfloat16)
        hp = _pad_last2(h_b.astype(jnp.float32), n_p, d_p).astype(jnp.bfloat16)

        flops = bsz * (2 * n_p * n_p * d_p + 2 * n_p * d_p * h_p        # layer 0
                       + 2 * n_p * h_p * (2 * c_p)                      # [W1|Wp]
                       + 2 * n_p * n_p * c_p)                           # A1 @ (h1 W1)
        bytes_accessed = (2 * (a0.size + a1.size + hp.size)
                          + 2 * (w0p.size + w1wp.size)
                          + 4 * (b0p.size + b1p.size + bsz * n_p * c_p))

        # VMEM budget: double-buffered per-graph blocks + resident weights + headroom.
        per_step = 2 * (2 * 2 * n_p * n_p + 2 * n_p * d_p + 4 * n_p * c_p)
        resident = 2 * (2 * d_p * h_p + 2 * h_p * 2 * c_p + 4 * h_p + 4 * c_p)
        vmem_limit = int(min(max(per_step + resident + (4 << 20), 16 << 20), 64 << 20))

        out = pl.pallas_call(
            gin_net_fused_kernel,
            out_shape=jax.ShapeDtypeStruct((bsz, n_p, c_p), jnp.float32),
            grid_spec=pltpu.PrefetchScalarGridSpec(
                num_scalar_prefetch=0,
                grid=(bsz,),
                in_specs=[
                    pl.BlockSpec((1, n_p, n_p), lambda b: (b, 0, 0)),   # A0 (per graph)
                    pl.BlockSpec((1, n_p, n_p), lambda b: (b, 0, 0)),   # A1 (per graph)
                    pl.BlockSpec((1, n_p, d_p), lambda b: (b, 0, 0)),   # h  (per graph)
                    pl.BlockSpec((d_p, h_p), lambda b: (0, 0)),         # W0 (resident)
                    pl.BlockSpec((1, h_p), lambda b: (0, 0)),           # b0
                    pl.BlockSpec((h_p, 2 * c_p), lambda b: (0, 0)),     # [W1 | Wp]
                    pl.BlockSpec((1, c_p), lambda b: (0, 0)),           # b1
                ],
                out_specs=pl.BlockSpec((1, n_p, c_p), lambda b: (b, 0, 0)),
            ),
            compiler_params=pltpu.CompilerParams(
                dimension_semantics=("parallel",),
                vmem_limit_bytes=vmem_limit),
            cost_estimate=pl.CostEstimate(flops=flops, transcendentals=0,
                                          bytes_accessed=bytes_accessed),
        )(a0, a1, hp, w0p, b0p, w1wp, b1p)

        return out[:, :n, :n_classes]

    return forward


# ---------------------------------------------------------------------------
# Parameter / graph construction (glue, plain JAX)
# ---------------------------------------------------------------------------
def torch_linear_init(key, fan_in, fan_out):
    """PyTorch nn.Linear default init; weight stored as [in, out] (i.e. W^T)."""
    kw, kb = jax.random.split(key)
    bound = 1.0 / jnp.sqrt(jnp.float32(fan_in))
    w = jax.random.uniform(kw, (fan_in, fan_out), jnp.float32, -bound, bound)
    b = jax.random.uniform(kb, (1, fan_out), jnp.float32, -bound, bound)
    return w, b


def build_graph(n_nodes):
    """Small deterministic directed graph: each node i -> (i+1)%N and (i+3)%N."""
    src = jnp.concatenate(
        [jnp.arange(n_nodes), jnp.arange(n_nodes)]).astype(jnp.int32)
    dst = jnp.concatenate(
        [(jnp.arange(n_nodes) + 1) % n_nodes,
         (jnp.arange(n_nodes) + 3) % n_nodes]).astype(jnp.int32)
    return src, dst


def build_masked_mean_adjacency(src, dst, edge_mask, n_nodes):
    """A_norm[v, u] = mask(u->v) / in_degree(v); rows with no in-edges are zero."""
    a = jnp.zeros((n_nodes, n_nodes), jnp.float32).at[dst, src].add(edge_mask)
    deg = jnp.zeros((n_nodes,), jnp.float32).at[dst].add(1.0)
    return a / jnp.maximum(deg, 1.0)[:, None]


def reference_forward(params, a_norm_b, h_b):
    """Pure-JAX f32 reference (batched) for correctness check."""
    def layer(hh, w, b, eps):
        neigh = jnp.einsum('bij,bjd->bid', a_norm_b, hh)
        return jnp.maximum(((1.0 + eps[0]) * hh + neigh) @ w + b, 0.0)
    h1 = layer(h_b, params["w0"], params["b0"], params["eps0"])
    h2 = layer(h1, params["w1"], params["b1"], params["eps1"])
    return (h1 @ params["wp"] + h2) * 0.5


# ---------------------------------------------------------------------------
if __name__ == "__main__":
    BATCH = 4           # graphs per launch (amortizes launch / DMA latency)
    N_NODES = 32        # graph nodes
    IN_DIM = 16         # net_params[0]
    HIDDEN_DIM = 32     # net_params[1]
    N_CLASSES = 8       # net_params[2]

    key = jax.random.PRNGKey(0)
    k_h, k_m, k_l0, k_l1, k_lp = jax.random.split(key, 5)

    # graph + edge masks. The module initializes adj_mask1_train to ones; random
    # values here just exercise the masked-aggregation path non-trivially per graph.
    src, dst = build_graph(N_NODES)
    edge_num = src.shape[0]
    adj_mask1_train = jax.random.uniform(k_m, (BATCH, edge_num), jnp.float32, 0.25, 1.0)
    adj_mask2_fixed = jnp.ones((BATCH, edge_num), jnp.float32)
    edge_mask = adj_mask1_train * adj_mask2_fixed
    a_norm_b = jax.vmap(
        lambda m: build_masked_mean_adjacency(src, dst, m, N_NODES))(edge_mask)

    # parameters (deterministic, PyTorch-default-style init)
    w0, b0 = torch_linear_init(k_l0, IN_DIM, HIDDEN_DIM)      # layer-0 MLP
    w1, b1 = torch_linear_init(k_l1, HIDDEN_DIM, N_CLASSES)   # layer-1 MLP
    wp, _ = torch_linear_init(k_lp, HIDDEN_DIM, N_CLASSES)    # linears_prediction (no bias)
    params = dict(
        w0=w0, b0=b0, eps0=jnp.zeros((1,), jnp.float32),
        w1=w1, b1=b1, eps1=jnp.zeros((1,), jnp.float32),
        wp=wp,
    )

    # node features
    h_b = jax.random.normal(k_h, (BATCH, N_NODES, IN_DIM), jnp.float32)

    forward = make_gin_forward(params)
    out = jax.block_until_ready(forward(a_norm_b, h_b))

    ref = reference_forward(params, a_norm_b, h_b)
    assert out.shape == (BATCH, N_NODES, N_CLASSES)
    # bf16 operands / f32 accumulation -> loosened tolerance vs. the f32 reference.
    assert jnp.allclose(out, ref, atol=5e-2, rtol=5e-2), (
        "mismatch vs pure-JAX f32 reference (beyond bf16 operand tolerance)")

    print("KERNEL_OK")
</pallas_src>

<mosaic_0001>
module attributes {stable_mosaic.version = 11 : i64} {
  func.func @gin_net_fused_kernel(%arg0: i32, %arg1: memref<1x32x32xbf16, #tpu.memory_space<vmem>>, %arg2: memref<1x32x32xbf16, #tpu.memory_space<vmem>>, %arg3: memref<1x32x128xbf16, #tpu.memory_space<vmem>>, %arg4: memref<128x128xbf16, #tpu.memory_space<vmem>>, %arg5: memref<1x128xf32, #tpu.memory_space<vmem>>, %arg6: memref<128x256xbf16, #tpu.memory_space<vmem>>, %arg7: memref<1x128xf32, #tpu.memory_space<vmem>>, %arg8: memref<1x32x128xf32, #tpu.memory_space<vmem>>) attributes {dimension_semantics = [#tpu.dimension_semantics<parallel>], iteration_bounds = array<i64: 4>, scalar_prefetch = 0 : i64, scratch_operands = 0 : i64, tpu.core_type = #tpu.core_type<tc>, window_params = [{transform_indices = @transform_0, window_bounds = array<i64: 1, 32, 32>}, {transform_indices = @transform_1, window_bounds = array<i64: 1, 32, 32>}, {transform_indices = @transform_2, window_bounds = array<i64: 1, 32, 128>}, {pipeline_mode = #tpu.pipeline_mode<synchronous>, transform_indices = @transform_3, window_bounds = array<i64: 128, 128>}, {pipeline_mode = #tpu.pipeline_mode<synchronous>, transform_indices = @transform_4, window_bounds = array<i64: 1, 128>}, {pipeline_mode = #tpu.pipeline_mode<synchronous>, transform_indices = @transform_5, window_bounds = array<i64: 128, 256>}, {pipeline_mode = #tpu.pipeline_mode<synchronous>, transform_indices = @transform_6, window_bounds = array<i64: 1, 128>}, {transform_indices = @transform_7, window_bounds = array<i64: 1, 32, 128>}]} {
    %c0 = arith.constant 0 : index
    %c0_0 = arith.constant 0 : index
    %c0_1 = arith.constant 0 : index
    %0 = vector.load %arg1[%c0, %c0_0, %c0_1] : memref<1x32x32xbf16, #tpu.memory_space<vmem>>, vector<1x32x32xbf16>
    %1 = vector.shape_cast %0 : vector<1x32x32xbf16> to vector<32x32xbf16>
    %c0_2 = arith.constant 0 : index
    %c0_3 = arith.constant 0 : index
    %c0_4 = arith.constant 0 : index
    %2 = vector.load %arg2[%c0_2, %c0_3, %c0_4] : memref<1x32x32xbf16, #tpu.memory_space<vmem>>, vector<1x32x32xbf16>
    %3 = vector.shape_cast %2 : vector<1x32x32xbf16> to vector<32x32xbf16>
    %c0_5 = arith.constant 0 : index
    %c0_6 = arith.constant 0 : index
    %c0_7 = arith.constant 0 : index
    %4 = vector.load %arg3[%c0_5, %c0_6, %c0_7] : memref<1x32x128xbf16, #tpu.memory_space<vmem>>, vector<1x32x128xbf16>
    %5 = vector.shape_cast %4 : vector<1x32x128xbf16> to vector<32x128xbf16>
    %cst = arith.constant dense<0.000000e+00> : vector<32x128xf32>
    %6 = tpu.matmul %1, %5, %cst {dimension_numbers = #tpu.dot_dimension_numbers<[1], [0], [0], [1], [0, 0, 1, 1], [], []>} : vector<32x32xbf16>, vector<32x128xbf16>, vector<32x128xf32> -> vector<32x128xf32>
    %7 = arith.truncf %6 : vector<32x128xf32> to vector<32x128xbf16>
    %c0_8 = arith.constant 0 : index
    %c0_9 = arith.constant 0 : index
    %8 = vector.load %arg4[%c0_8, %c0_9] : memref<128x128xbf16, #tpu.memory_space<vmem>>, vector<128x128xbf16>
    %cst_10 = arith.constant dense<0.000000e+00> : vector<32x128xf32>
    %9 = tpu.matmul %7, %8, %cst_10 {dimension_numbers = #tpu.dot_dimension_numbers<[1], [0], [0], [1], [0, 0, 1, 1], [], []>} : vector<32x128xbf16>, vector<128x128xbf16>, vector<32x128xf32> -> vector<32x128xf32>
    %c0_11 = arith.constant 0 : index
    %c0_12 = arith.constant 0 : index
    %10 = vector.load %arg5[%c0_11, %c0_12] : memref<1x128xf32, #tpu.memory_space<vmem>>, vector<1x128xf32>
    %11 = vector.broadcast %10 : vector<1x128xf32> to vector<32x128xf32>
    %12 = arith.addf %9, %11 : vector<32x128xf32>
    %cst_13 = arith.constant 0.000000e+00 : f32
    %13 = vector.broadcast %cst_13 : f32 to vector<32x128xf32>
    %14 = arith.maximumf %12, %13 : vector<32x128xf32>
    %15 = arith.truncf %14 : vector<32x128xf32> to vector<32x128xbf16>
    %c0_14 = arith.constant 0 : index
    %c0_15 = arith.constant 0 : index
    %16 = vector.load %arg6[%c0_14, %c0_15] : memref<128x256xbf16, #tpu.memory_space<vmem>>, vector<128x256xbf16>
    %cst_16 = arith.constant dense<0.000000e+00> : vector<32x256xf32>
    %17 = tpu.matmul %15, %16, %cst_16 {dimension_numbers = #tpu.dot_dimension_numbers<[1], [0], [0], [1], [0, 0, 1, 1], [], []>} : vector<32x128xbf16>, vector<128x256xbf16>, vector<32x256xf32> -> vector<32x256xf32>
    %18 = vector.extract_strided_slice %17 {offsets = [0, 0], sizes = [32, 128], strides = [1, 1]} : vector<32x256xf32> to vector<32x128xf32>
    %19 = vector.extract_strided_slice %17 {offsets = [0, 128], sizes = [32, 128], strides = [1, 1]} : vector<32x256xf32> to vector<32x128xf32>
    %20 = arith.truncf %18 : vector<32x128xf32> to vector<32x128xbf16>
    %cst_17 = arith.constant dense<0.000000e+00> : vector<32x128xf32>
    %21 = tpu.matmul %3, %20, %cst_17 {dimension_numbers = #tpu.dot_dimension_numbers<[1], [0], [0], [1], [0, 0, 1, 1], [], []>} : vector<32x32xbf16>, vector<32x128xbf16>, vector<32x128xf32> -> vector<32x128xf32>
    %c0_18 = arith.constant 0 : index
    %c0_19 = arith.constant 0 : index
    %22 = vector.load %arg7[%c0_18, %c0_19] : memref<1x128xf32, #tpu.memory_space<vmem>>, vector<1x128xf32>
    %23 = vector.broadcast %22 : vector<1x128xf32> to vector<32x128xf32>
    %24 = arith.addf %21, %23 : vector<32x128xf32>
    %cst_20 = arith.constant 0.000000e+00 : f32
    %25 = vector.broadcast %cst_20 : f32 to vector<32x128xf32>
    %26 = arith.maximumf %24, %25 : vector<32x128xf32>
    %27 = arith.addf %19, %26 : vector<32x128xf32>
    %cst_21 = arith.constant 5.000000e-01 : f32
    %28 = vector.broadcast %cst_21 : f32 to vector<32x128xf32>
    %29 = arith.mulf %27, %28 : vector<32x128xf32>
    %c0_22 = arith.constant 0 : index
    %c0_23 = arith.constant 0 : index
    %c0_24 = arith.constant 0 : index
    %30 = vector.load %arg8[%c0_22, %c0_23, %c0_24] : memref<1x32x128xf32, #tpu.memory_space<vmem>>, vector<1x32x128xf32>
    %31 = vector.shape_cast %30 : vector<1x32x128xf32> to vector<32x128xf32>
    %32 = vector.shape_cast %29 : vector<32x128xf32> to vector<1x32x128xf32>
    tpu.vector_store %arg8[%c0_22, %c0_23, %c0_24], %32 {strides = array<i32>} : memref<1x32x128xf32, #tpu.memory_space<vmem>>, vector<1x32x128xf32>,
    return
  }
  func.func @transform_0(%arg0: i32) -> (i32, i32, i32) {
    %c0_i32 = arith.constant 0 : i32
    %c0_i32_0 = arith.constant 0 : i32
    %c0_i32_1 = arith.constant 0 : i32
    return %arg0, %c0_i32, %c0_i32_0 : i32, i32, i32
  }
  func.func @transform_1(%arg0: i32) -> (i32, i32, i32) {
    %c0_i32 = arith.constant 0 : i32
    %c0_i32_0 = arith.constant 0 : i32
    %c0_i32_1 = arith.constant 0 : i32
    return %arg0, %c0_i32, %c0_i32_0 : i32, i32, i32
  }
  func.func @transform_2(%arg0: i32) -> (i32, i32, i32) {
    %c0_i32 = arith.constant 0 : i32
    %c0_i32_0 = arith.constant 0 : i32
    %c0_i32_1 = arith.constant 0 : i32
    return %arg0, %c0_i32, %c0_i32_0 : i32, i32, i32
  }
  func.func @transform_3(%arg0: i32) -> (i32, i32) {
    %c0_i32 = arith.constant 0 : i32
    %c0_i32_0 = arith.constant 0 : i32
    %c0_i32_1 = arith.constant 0 : i32
    return %c0_i32, %c0_i32_0 : i32, i32
  }
  func.func @transform_4(%arg0: i32) -> (i32, i32) {
    %c0_i32 = arith.constant 0 : i32
    %c0_i32_0 = arith.constant 0 : i32
    %c0_i32_1 = arith.constant 0 : i32
    return %c0_i32, %c0_i32_0 : i32, i32
  }
  func.func @transform_5(%arg0: i32) -> (i32, i32) {
    %c0_i32 = arith.constant 0 : i32
    %c0_i32_0 = arith.constant 0 : i32
    %c0_i32_1 = arith.constant 0 : i32
    return %c0_i32, %c0_i32_0 : i32, i32
  }
  func.func @transform_6(%arg0: i32) -> (i32, i32) {
    %c0_i32 = arith.constant 0 : i32
    %c0_i32_0 = arith.constant 0 : i32
    %c0_i32_1 = arith.constant 0 : i32
    return %c0_i32, %c0_i32_0 : i32, i32
  }
  func.func @transform_7(%arg0: i32) -> (i32, i32, i32) {
    %c0_i32 = arith.constant 0 : i32
    %c0_i32_0 = arith.constant 0 : i32
    %c0_i32_1 = arith.constant 0 : i32
    return %arg0, %c0_i32, %c0_i32_0 : i32, i32, i32
  }
}

</mosaic_0001>

<bundles_post_ra>
// kernel: forward.1
= control target key start
LH: loop header
LB: loop body
LE: loop exit
PB: predicated region body
PF: predicated region fallthrough
CT: control target
= control target key end

     0   :  { %s1061_s24 = smov 0   ;;  %s1174_s0 = inlined_call_operand.vmem [shape: bf16[4,32,32], index: 0, kind: input, shape index: {}, may-alias: {0,1}]   ;;  %s1175_s1 = inlined_call_operand.vmem [shape: bf16[4,32,32], index: 1, kind: input, shape index: {}, may-alias: {0,1}]   ;;  %s1176_s2 = inlined_call_operand.vmem [shape: bf16[4,32,128], index: 2, kind: input, shape index: {}]   ;;  %s1177_s3 = inlined_call_operand.vmem [shape: bf16[128,128], index: 3, kind: input, shape index: {}]   ;;  %s1178_s4 = inlined_call_operand.vmem [shape: f32[1,128], index: 4, kind: input, shape index: {}]   ;;  %s1179_s5 = inlined_call_operand.vmem [shape: bf16[128,256], index: 5, kind: input, shape index: {}]   ;;  %s1180_s6 = inlined_call_operand.vmem [shape: f32[1,128], index: 6, kind: input, shape index: {}]   ;;  %s1181_s7 = inlined_call_operand.vmem [shape: f32[4,32,128], index: 7, kind: output, shape index: {}]  }
   0x1 LB: > { %s856_s25 = sadd.s32 4294967295, %s1018_s24   ;;  %p860_p0 = scmp.ge.s32.totalorder %s1018_s24, 1  ;;  %s1018_s24 = sphi %s1061_s24, %s17_s24  }
   0x2   : > { %p257_p1 = scmp.lt.s32.totalorder %s1018_s24, 5 }
   0x4   : > { %p258_p2 = pnand %p860_p0, %p257_p1 }
   0x5   : > { %p299_p3 = scmp.lt.s32.totalorder (!%p258_p2), %s856_s25, 3 }
   0x6   : > { %261 = sbr.rel (%p258_p2) target bundleno = 853 (0x355), region = 48 }
   0xb   : > { %v978_v0 = vld [vmem:[%s1177_s3 + $0x38] sm:$0xff]   ;;  %s1183_s25 = smov (!%p299_p3, %s856_s25), 3  ;;  %v979_v1 = vld [vmem:[%s1177_s3 + $0x30] sm:$0xff]   ;;  %v980_v2 = vld [vmem:[%s1177_s3 + $0x28] sm:$0xff]   ;;  %vm354_vm0 = vcmask 261120   ;;  %v1020_v34 = vmov 0  }
   0xc   : > { %937 = vmatprep.subr.bf16.mxu1 %v978_v0  ;;  %s907_s30 = sshll.u32 %s1183_s25, 4  ;;  %v981_v6 = vld [vmem:[%s1177_s3 + $0x20] sm:$0xff]   ;;  %v982_v8 = vld [vmem:[%s1177_s3 + $0x18] sm:$0xff]   ;;  %v983_v9 = vld [vmem:[%s1177_s3 + $0x10] sm:$0xff]   ;;  %s910_s27 = sshll.u32 %s1183_s25, 5 }
   0xd   : > { %938 = vmatpush3.bf16.msra.mxu1 %v978_v0  ;;  %s313_s10 = scalar_lea.vmem %s1176_s2, %s907_s30  ;;  %s303_s15 = scalar_lea.vmem %s1174_s0, %s907_s30  ;;  %v984_v10 = vld [vmem:[%s1177_s3 + $0x8] sm:$0xff]   ;;  %v985_v11 = vld [vmem:[%s1177_s3] sm:$0xff]   ;;  %v986_v12 = vld [vmem:[%s1179_s5 + $0x70] ss:$8 sps:$4 sm:$0xff]  }
   0xe   : > { %939 = vmatprep.subr.bf16.mxu1 %v979_v1  ;;  %v974_v3 = vld [vmem:[%s313_s10 + $0x8] sm:$0xff]   ;;  %v975_v4 = vld [vmem:[%s313_s10] sm:$0xff]   ;;  %s1100_s26 = scalar_lea.vmem %s1175_s1, %s907_s30  ;;  %v988_v13 = vld [vmem:[%s1179_s5 + $0x74] ss:$8 sps:$4 sm:$0xff]  }
   0xf   : > { %929 = vmatprep.subr.bf16.mxu0 %v974_v3  ;;  %v976_v5 = vld [vmem:[%s303_s15] sm:$0xff]   ;;  %v977_v7 = vld [vmem:[%s303_s15 + $0x8] sm:$0xff]   ;;  %v994_v16 = vld [vmem:[%s1179_s5 + $0x54] ss:$8 sps:$4 sm:$0xff]  }
  0x10   : > { %930 = vmatpush3.bf16.msra.mxu0 %v974_v3  ;;  %933 = vmatprep.mubr.msk.bf16.mxu0 %vm354_vm0, %v976_v5  ;;  %v991_v14 = vld [vmem:[%s1179_s5 + $0x64] ss:$8 sps:$4 sm:$0xff]   ;;  %v989_v15 = vld [vmem:[%s1179_s5 + $0x60] ss:$8 sps:$4 sm:$0xff]   ;;  %v992_v17 = vld [vmem:[%s1179_s5 + $0x50] ss:$8 sps:$4 sm:$0xff]  }
  0x11   : > { %940 = vmatpush3.bf16.msra.mxu1 %v979_v1  ;;  %931 = vmatprep.subr.bf16.mxu0 %v975_v4  ;;  %v997_v18 = vld [vmem:[%s1179_s5 + $0x44] ss:$8 sps:$4 sm:$0xff]   ;;  %v995_v19 = vld [vmem:[%s1179_s5 + $0x40] ss:$8 sps:$4 sm:$0xff]   ;;  %v1000_v20 = vld [vmem:[%s1179_s5 + $0x34] ss:$8 sps:$4 sm:$0xff]  }
  0x12   : > { %941 = vmatprep.subr.bf16.mxu1 %v980_v2  ;;  %v998_v21 = vld [vmem:[%s1179_s5 + $0x30] ss:$8 sps:$4 sm:$0xff]   ;;  %v1003_v28 = vld [vmem:[%s1179_s5 + $0x24] ss:$8 sps:$4 sm:$0xff]   ;;  %v1001_v29 = vld [vmem:[%s1179_s5 + $0x20] ss:$8 sps:$4 sm:$0xff]  }
  0x13   : > { %v1006_v30 = vld [vmem:[%s1179_s5 + $0x14] ss:$8 sps:$4 sm:$0xff]   ;;  %v1004_v31 = vld [vmem:[%s1179_s5 + $0x10] ss:$8 sps:$4 sm:$0xff]   ;;  %v1009_v32 = vld [vmem:[%s1179_s5 + $0x4] ss:$8 sps:$4 sm:$0xff]  }
  0x14   : > { %932 = vmatpush3.bf16.msra.mxu0 %v975_v4  ;;  %v1007_v33 = vld [vmem:[%s1179_s5] ss:$8 sps:$4 sm:$0xff]  }
  0x15   : > { %942 = vmatpush3.bf16.msra.mxu1 %v980_v2  ;;  %634 = vmatprep.subr.bf16.mxu0 %v988_v13  ;;  %v875_v37 = vld [vmem:[%s1178_s4] ss:$0 sm:$0xff]  ;;  %v1011_v60 = vld [vmem:[%s1100_s26 + $0x8] sm:$0xff]  }
  0x16   : > { %943 = vmatprep.subr.bf16.mxu1 %v981_v6  ;;  %v1010_v50 = vld [vmem:[%s1100_s26] sm:$0xff]   ;;  %s318_s26 = scalar_lea.vmem %s1181_s7, %s910_s27 }
  0x17   : > { %934 = vmatmul.mubr.msk.bf16.vlgmr.msra.gmra.mxu0 %vm354_vm0, %v977_v7  ;;  %v900_v61 = vld [vmem:[%s1180_s6] ss:$0 sm:$0xff] }
  0x18   : > { %635 = vmatpush1.bf16.msra.mxu0 %v986_v12  ;;  %666 = vmatprep.mubr.bf16.mxu0 %v1020_v34 }
  0x19   : > { %944 = vmatpush3.bf16.msra.mxu1 %v981_v6  ;;  %636 = vmatprep.subr.bf16.mxu0 %v991_v14 }
  0x1a   : > { %945 = vmatprep.subr.bf16.mxu1 %v982_v8 }
  0x1c   : > { %637 = vmatpush1.bf16.msra.mxu0 %v989_v15 }
  0x1d   : > { %946 = vmatpush3.bf16.msra.mxu1 %v982_v8  ;;  %638 = vmatprep.subr.bf16.mxu0 %v994_v16 }
  0x1e   : > { %947 = vmatprep.subr.bf16.mxu1 %v983_v9 }
  0x20   : > { %639 = vmatpush1.bf16.msra.mxu0 %v992_v17 }
  0x21   : > { %948 = vmatpush3.bf16.msra.mxu1 %v983_v9  ;;  %640 = vmatprep.subr.bf16.mxu0 %v997_v18 }
  0x22   : > { %949 = vmatprep.subr.bf16.mxu1 %v984_v10 }
  0x24   : > { %641 = vmatpush1.bf16.msra.mxu0 %v995_v19 }
  0x25   : > { %950 = vmatpush3.bf16.msra.mxu1 %v984_v10  ;;  %642 = vmatprep.subr.bf16.mxu0 %v1000_v20 }
  0x26   : > { %951 = vmatprep.subr.bf16.mxu1 %v985_v11 }
  0x28   : > { %643 = vmatpush1.bf16.msra.mxu0 %v998_v21 }
  0x29   : > { %952 = vmatpush3.bf16.msra.mxu1 %v985_v11  ;;  %644 = vmatprep.subr.bf16.mxu0 %v1003_v28 }
  0x2c   : > { %645 = vmatpush1.bf16.msra.mxu0 %v1001_v29 }
  0x2d   : > { %646 = vmatprep.subr.bf16.mxu0 %v1006_v30 }
  0x30   : > { %647 = vmatpush1.bf16.msra.mxu0 %v1004_v31 }
  0x31   : > { %648 = vmatprep.subr.bf16.mxu0 %v1009_v32 }
  0x34   : > { %649 = vmatpush1.bf16.msra.mxu0 %v1007_v33 }
  0xd7   : > { %v935_v22 = vpop.f32.mrf.mxu0 }
  0xd9   : > { %v395_v23 = vpop.f32.mrf.mxu0 }
  0xdb   : > { %v936_v24 = vpop.f32.mrf.mxu0 }
  0xdc   : > { %v411_v27 = vpack.c.bf16 %v936_v24, %v935_v22 }
  0xdd   : > { %v398_v25 = vpop.f32.mrf.mxu0 }
  0xde   : > { %v410_v26 = vpack.c.bf16 %v398_v25, %v395_v23 }
  0xe0   : > { %953 = vmatprep.mubr.bf16.mxu1 %v410_v26 }
  0xe1   : > { %954 = vmatmul.mubr.bf16.vlgmr.msra.gmra.mxu1 %v411_v27 }
  0xe2   : > { %961 = vmatprep.mubr.msk.bf16.mxu1 %vm354_vm0, %v1010_v50 }
 0x1a1   : > { %v955_v35 = vpop.f32.mrf.mxu1 }
 0x1a2   : > { %v526_v46 = vadd.f32 %v955_v35, %v875_v37 }
 0x1a3   : > { %v517_v36 = vpop.f32.mrf.mxu1 }
 0x1a4   : > { %v518_v39 = vadd.f32 %v875_v37, %v517_v36  ;;  %v534_v48 = vmax.f32 %v526_v46, 0.0 }
 0x1a5   : > { %v956_v38 = vpop.f32.mrf.mxu1 }
 0x1a6   : > { %v532_v42 = vmax.f32 %v518_v39, 0.0  ;;  %v529_v44 = vadd.f32 %v956_v38, %v875_v37 }
 0x1a7   : > { %v520_v40 = vpop.f32.mrf.mxu1 }
 0x1a8   : > { %v521_v41 = vadd.f32 %v875_v37, %v520_v40  ;;  %v535_v47 = vmax.f32 %v529_v44, 0.0 }
 0x1aa   : > { %v533_v43 = vmax.f32 %v521_v41, 0.0  ;;  %v537_v49 = vpack.c.bf16 %v535_v47, %v534_v48 }
 0x1ac   : > { %v536_v45 = vpack.c.bf16 %v533_v43, %v532_v42 }
 0x1ae   : > { %667 = vmatmul.mubr.bf16.vlgmr.msra.gmra.mxu0 %v536_v45 }
 0x1af   : > { %676 = vmatprep.mubr.bf16.mxu0 %v1020_v34 }
 0x1b6   : > { %677 = vmatmul.mubr.bf16.gmra.mxu0 %v537_v49 }
 0x26e   : > { %v668_v51 = vpop.f32.mrf.mxu0 }
 0x270   : > { %v670_v52 = vpop.f32.mrf.mxu0 }
 0x272   : > { %v672_v53 = vpop.f32.mrf.mxu0 }
 0x273   : > { %v687_v59 = vpack.c.bf16 %v672_v53, %v668_v51 }
 0x274   : > { %v674_v54 = vpop.f32.mrf.mxu0 }
 0x276   : > { %v678_v55 = vpop.f32.mrf.mxu0 }
 0x278   : > { %v680_v56 = vpop.f32.mrf.mxu0 }
 0x27a   : > { %v682_v57 = vpop.f32.mrf.mxu0 }
 0x27b   : > { %v688_v58 = vpack.c.bf16 %v682_v57, %v678_v55 }
 0x27c   : > { %v684_v12 = vpop.f32.mrf.mxu0 }
 0x27d   : > { %957 = vmatprep.subr.bf16.mxu1 %v688_v58 }
 0x27e   : > { %958 = vmatpush3.bf16.msra.mxu1 %v688_v58 }
 0x27f   : > { %959 = vmatprep.subr.bf16.mxu1 %v687_v59 }
 0x282   : > { %960 = vmatpush3.bf16.msra.mxu1 %v687_v59 }
 0x285   : > { %962 = vmatmul.mubr.msk.bf16.vlgmr.msra.gmra.mxu1 %vm354_vm0, %v1011_v60 }
 0x345   : > { %v963_v62 = vpop.f32.mrf.mxu1 }
 0x346   : > { %v755_v63 = vadd.f32 %v963_v62, %v900_v61 }
 0x347   : > { %v746_v0 = vpop.f32.mrf.mxu1 }
 0x348   : > { %v763_v1 = vmax.f32 %v755_v63, 0.0  ;;  %v747_v2 = vadd.f32 %v900_v61, %v746_v0 }
 0x349   : > { %v964_v3 = vpop.f32.mrf.mxu1 }
 0x34a   : > { %v767_v4 = vadd.f32 %v763_v1, %v680_v56  ;;  %v761_v5 = vmax.f32 %v747_v2, 0.0  ;;  %v758_v6 = vadd.f32 %v964_v3, %v900_v61 }
 0x34b   : > { %v749_v7 = vpop.f32.mrf.mxu1 }
 0x34c   : > { %v771_v8 = vmul.f32 0.5, %v767_v4  ;;  %v765_v9 = vadd.f32 %v761_v5, %v670_v52  ;;  %v764_v10 = vmax.f32 %v758_v6, 0.0  ;;  %v750_v11 = vadd.f32 %v900_v61, %v749_v7 }
 0x34e   : > { %775 = vst [vmem:[%s318_s26 + $0x10] sm:$0xff] %v771_v8  ;;  %v769_v13 = vmul.f32 0.5, %v765_v9  ;;  %v768_v14 = vadd.f32 %v764_v10, %v684_v12  ;;  %v762_v15 = vmax.f32 %v750_v11, 0.0 }
 0x350   : > { %773 = vst [vmem:[%s318_s26] sm:$0xff] %v769_v13  ;;  %v772_v16 = vmul.f32 0.5, %v768_v14  ;;  %v766_v17 = vadd.f32 %v762_v15, %v674_v54 }
 0x352   : > { %776 = vst [vmem:[%s318_s26 + $0x18] sm:$0xff] %v772_v16  ;;  %v770_v18 = vmul.f32 0.5, %v766_v17 }
 0x354   : > { %774 = vst [vmem:[%s318_s26 + $0x8] sm:$0xff] %v770_v18 }
 0x355 PF: > { %s17_s24 = sadd.s32 1, %s1018_s24  }
 0x356   : > { %p14_p4 = scmp.ge.s32.totalorder %s17_s24, 6  }
 0x358   :  { %16 = sbr.rel (!%p14_p4) target bundleno = 1 (0x1), region = 84 }

</bundles_post_ra>
